<compile_context>
chip_gen: v7x
topology: tpu7x:2x2x1
jax: 0.10.0
libtpu: 0.0.40
codegen_flags: <defaults>
</compile_context>

<pallas_src>
import functools

import jax
import jax.numpy as jnp
import numpy as np
from jax.experimental import pallas as pl
from jax.experimental.pallas import tpu as pltpu

F_PAD = 128  # lane-dense padded feature width used for every layer


# ----------------------------------------------------------------------------
# Fused kernel: the whole SAGENet forward in one kernel body.
# ----------------------------------------------------------------------------
def _fused_sagenet_kernel(*refs, num_layers):
    """refs = (a_ref, d_ref, x_ref, w0, b0, w1, b1, ..., o_ref)

    a_ref : [Np, Np]          bf16 un-normalized adjacency counts A[i,j] = #(j->i)
    d_ref : [Np, 1]           f32  1/deg(i) (0 where deg == 0)
    x_ref : [Np, F_PAD]       bf16 zero-padded node features
    w_l   : [2*F_PAD, F_PAD]  bf16 stacked [W_l^T ; W_r^T], zero padded
    b_l   : [1, F_PAD]        f32  lin_l bias, zero padded
    o_ref : [Np, F_PAD]       f32  lane-dense output slab (col 0 = prediction)
    """
    a_ref, d_ref, x_ref, o_ref = refs[0], refs[1], refs[2], refs[-1]
    wb_refs = refs[3:-1]

    a = a_ref[...]          # bf16 counts; loaded once, reused for every layer
    inv_deg = d_ref[...]    # f32 normalization
    h = x_ref[...]          # bf16 activations
    out = None
    for l in range(num_layers):                     # statically unrolled
        w_ref = wb_refs[2 * l]
        b_ref = wb_refs[2 * l + 1]
        # neighbor sum on the MXU (bf16 in, f32 accumulation), then f32 mean
        sums = jnp.dot(a, h, preferred_element_type=jnp.float32)
        aggr = sums * inv_deg                       # [Np, F_PAD] f32
        # single merged MXU matmul: [aggr | x] @ [W_l^T ; W_r^T]  (bf16, f32 acc)
        cat = jnp.concatenate([aggr.astype(jnp.bfloat16), h], axis=-1)
        out = jnp.dot(cat, w_ref[...],
                      preferred_element_type=jnp.float32) + b_ref[...]
        if l < num_layers - 1:                      # ReLU on all but last layer
            out = jnp.maximum(out, 0.0)
            h = out.astype(jnp.bfloat16)
    o_ref[...] = out


def sagenet_forward_pallas(a_counts, inv_deg, x, packed_weights, packed_biases):
    """Run the fused SAGENet forward. Returns [N, 1] f32 predictions."""
    n = x.shape[0]
    n_pad = ((n + 7) // 8) * 8                      # sublane-align node dim
    num_layers = len(packed_weights)

    a_pad = jnp.zeros((n_pad, n_pad), jnp.float32).at[:n, :n].set(a_counts)
    d_pad = jnp.zeros((n_pad, 1), jnp.float32).at[:n, :].set(inv_deg)
    x_pad = jnp.zeros((n_pad, F_PAD), jnp.float32).at[:n, : x.shape[1]].set(x)

    operands = [a_pad.astype(jnp.bfloat16), d_pad, x_pad.astype(jnp.bfloat16)]
    for w, b in zip(packed_weights, packed_biases):
        operands.append(w)
        operands.append(b)

    kernel = functools.partial(_fused_sagenet_kernel, num_layers=num_layers)
    vmem_spec = pl.BlockSpec(memory_space=pltpu.MemorySpace.VMEM)
    out_pad = pl.pallas_call(
        kernel,
        out_shape=jax.ShapeDtypeStruct((n_pad, F_PAD), jnp.float32),
        in_specs=[vmem_spec] * len(operands),
        out_specs=vmem_spec,
    )(*operands)
    return out_pad[:n, :1]


# ----------------------------------------------------------------------------
# Glue (plain JAX): adjacency construction, parameter init / packing, reference.
# ----------------------------------------------------------------------------
def build_adjacency(edge_index, num_nodes):
    """Dense edge-count adjacency A[i, j] = #(j -> i) and 1/deg(i)."""
    src, dst = edge_index[0], edge_index[1]
    a = jnp.zeros((num_nodes, num_nodes), jnp.float32)
    a = a.at[dst, src].add(1.0)
    deg = jnp.sum(a, axis=1, keepdims=True)
    inv_deg = jnp.where(deg > 0, 1.0 / jnp.maximum(deg, 1.0), 0.0)
    return a, inv_deg


def init_sage_layer(key, f_in, f_out):
    k1, k2, k3 = jax.random.split(key, 3)
    w_l = jax.random.normal(k1, (f_in, f_out), jnp.float32) * 0.1  # lin_l W^T
    w_r = jax.random.normal(k2, (f_in, f_out), jnp.float32) * 0.1  # lin_r W^T
    b = jax.random.normal(k3, (f_out,), jnp.float32) * 0.1          # lin_l bias
    return w_l, w_r, b


def init_sagenet_params(key, in_feats, hidden_layers):
    dims = [in_feats] + list(hidden_layers) + [1]
    keys = jax.random.split(key, len(dims) - 1)
    return [init_sage_layer(k, fi, fo)
            for k, fi, fo in zip(keys, dims[:-1], dims[1:])]


def pack_sage_layer(w_l, w_r, b):
    """Stack [W_l^T ; W_r^T] into one zero-padded bf16 [2*F_PAD, F_PAD] matrix."""
    f_in, f_out = w_l.shape
    w = jnp.zeros((2 * F_PAD, F_PAD), jnp.float32)
    w = w.at[:f_in, :f_out].set(w_l)                    # rows 0..F_PAD-1  -> aggr
    w = w.at[F_PAD:F_PAD + f_in, :f_out].set(w_r)       # rows F_PAD..     -> x
    b_pad = jnp.zeros((1, F_PAD), jnp.float32).at[0, :f_out].set(b)
    return w.astype(jnp.bfloat16), b_pad


def sagenet_reference(params, x, a_counts, inv_deg):
    """Pure-JAX f32 reference of the same forward pass."""
    h = x
    n_layers = len(params)
    for i, (w_l, w_r, b) in enumerate(params):
        aggr = (a_counts @ h) * inv_deg
        h_new = aggr @ w_l + h @ w_r + b
        if i < n_layers - 1:
            h_new = jnp.maximum(h_new, 0.0)
        h = h_new
    return h


# ----------------------------------------------------------------------------
if __name__ == "__main__":
    key = jax.random.PRNGKey(0)
    k_x, k_e, k_p = jax.random.split(key, 3)

    num_nodes = 16
    in_feats = 8
    hidden_layers = [32, 32]
    num_edges = 48

    # node features and a random directed edge list (data.x, data.edge_index)
    x = jax.random.normal(k_x, (num_nodes, in_feats), jnp.float32)
    edge_index = jax.random.randint(k_e, (2, num_edges), 0, num_nodes, jnp.int32)

    a_counts, inv_deg = build_adjacency(edge_index, num_nodes)
    params = init_sagenet_params(k_p, in_feats, hidden_layers)

    packed_w, packed_b = [], []
    for w_l, w_r, b in params:
        w, bp = pack_sage_layer(w_l, w_r, b)
        packed_w.append(w)
        packed_b.append(bp)

    out = sagenet_forward_pallas(a_counts, inv_deg, x, packed_w, packed_b)
    out = jax.block_until_ready(out)
    assert out.shape == (num_nodes, 1)

    # correctness check vs. pure-JAX f32 reference (loose tol: bf16 weights/acts)
    ref = sagenet_reference(params, x, a_counts, inv_deg)
    np.testing.assert_allclose(np.asarray(out), np.asarray(ref),
                               rtol=2e-1, atol=5e-2)
    print("KERNEL_OK")
</pallas_src>

<mosaic_0001>
module attributes {stable_mosaic.version = 11 : i64} {
  func.func @_fused_sagenet_kernel(%arg0: memref<16x16xbf16, #tpu.memory_space<vmem>>, %arg1: memref<16x1xf32, #tpu.memory_space<vmem>>, %arg2: memref<16x128xbf16, #tpu.memory_space<vmem>>, %arg3: memref<256x128xbf16, #tpu.memory_space<vmem>>, %arg4: memref<1x128xf32, #tpu.memory_space<vmem>>, %arg5: memref<256x128xbf16, #tpu.memory_space<vmem>>, %arg6: memref<1x128xf32, #tpu.memory_space<vmem>>, %arg7: memref<256x128xbf16, #tpu.memory_space<vmem>>, %arg8: memref<1x128xf32, #tpu.memory_space<vmem>>, %arg9: memref<16x128xf32, #tpu.memory_space<vmem>>) attributes {dimension_semantics = [], scalar_prefetch = 0 : i64, scratch_operands = 0 : i64, tpu.core_type = #tpu.core_type<tc>} {
    %c0 = arith.constant 0 : index
    %c0_0 = arith.constant 0 : index
    %0 = vector.load %arg0[%c0, %c0_0] : memref<16x16xbf16, #tpu.memory_space<vmem>>, vector<16x16xbf16>
    %c0_1 = arith.constant 0 : index
    %c0_2 = arith.constant 0 : index
    %1 = vector.load %arg1[%c0_1, %c0_2] : memref<16x1xf32, #tpu.memory_space<vmem>>, vector<16x1xf32>
    %c0_3 = arith.constant 0 : index
    %c0_4 = arith.constant 0 : index
    %2 = vector.load %arg2[%c0_3, %c0_4] : memref<16x128xbf16, #tpu.memory_space<vmem>>, vector<16x128xbf16>
    %cst = arith.constant dense<0.000000e+00> : vector<16x128xf32>
    %3 = tpu.matmul %0, %2, %cst {dimension_numbers = #tpu.dot_dimension_numbers<[1], [0], [0], [1], [0, 0, 1, 1], [], []>} : vector<16x16xbf16>, vector<16x128xbf16>, vector<16x128xf32> -> vector<16x128xf32>
    %4 = vector.broadcast %1 : vector<16x1xf32> to vector<16x128xf32>
    %5 = arith.mulf %3, %4 : vector<16x128xf32>
    %6 = arith.truncf %5 : vector<16x128xf32> to vector<16x128xbf16>
    %7 = tpu.concatenate %6, %2 in 1 : vector<16x128xbf16>, vector<16x128xbf16> -> vector<16x256xbf16>
    %c0_5 = arith.constant 0 : index
    %c0_6 = arith.constant 0 : index
    %8 = vector.load %arg3[%c0_5, %c0_6] : memref<256x128xbf16, #tpu.memory_space<vmem>>, vector<256x128xbf16>
    %cst_7 = arith.constant dense<0.000000e+00> : vector<16x128xf32>
    %9 = tpu.matmul %7, %8, %cst_7 {dimension_numbers = #tpu.dot_dimension_numbers<[1], [0], [0], [1], [0, 0, 1, 1], [], []>} : vector<16x256xbf16>, vector<256x128xbf16>, vector<16x128xf32> -> vector<16x128xf32>
    %c0_8 = arith.constant 0 : index
    %c0_9 = arith.constant 0 : index
    %10 = vector.load %arg4[%c0_8, %c0_9] : memref<1x128xf32, #tpu.memory_space<vmem>>, vector<1x128xf32>
    %11 = vector.broadcast %10 : vector<1x128xf32> to vector<16x128xf32>
    %12 = arith.addf %9, %11 : vector<16x128xf32>
    %cst_10 = arith.constant 0.000000e+00 : f32
    %13 = vector.broadcast %cst_10 : f32 to vector<16x128xf32>
    %14 = arith.maximumf %12, %13 : vector<16x128xf32>
    %15 = arith.truncf %14 : vector<16x128xf32> to vector<16x128xbf16>
    %cst_11 = arith.constant dense<0.000000e+00> : vector<16x128xf32>
    %16 = tpu.matmul %0, %15, %cst_11 {dimension_numbers = #tpu.dot_dimension_numbers<[1], [0], [0], [1], [0, 0, 1, 1], [], []>} : vector<16x16xbf16>, vector<16x128xbf16>, vector<16x128xf32> -> vector<16x128xf32>
    %17 = vector.broadcast %1 : vector<16x1xf32> to vector<16x128xf32>
    %18 = arith.mulf %16, %17 : vector<16x128xf32>
    %19 = arith.truncf %18 : vector<16x128xf32> to vector<16x128xbf16>
    %20 = tpu.concatenate %19, %15 in 1 : vector<16x128xbf16>, vector<16x128xbf16> -> vector<16x256xbf16>
    %c0_12 = arith.constant 0 : index
    %c0_13 = arith.constant 0 : index
    %21 = vector.load %arg5[%c0_12, %c0_13] : memref<256x128xbf16, #tpu.memory_space<vmem>>, vector<256x128xbf16>
    %cst_14 = arith.constant dense<0.000000e+00> : vector<16x128xf32>
    %22 = tpu.matmul %20, %21, %cst_14 {dimension_numbers = #tpu.dot_dimension_numbers<[1], [0], [0], [1], [0, 0, 1, 1], [], []>} : vector<16x256xbf16>, vector<256x128xbf16>, vector<16x128xf32> -> vector<16x128xf32>
    %c0_15 = arith.constant 0 : index
    %c0_16 = arith.constant 0 : index
    %23 = vector.load %arg6[%c0_15, %c0_16] : memref<1x128xf32, #tpu.memory_space<vmem>>, vector<1x128xf32>
    %24 = vector.broadcast %23 : vector<1x128xf32> to vector<16x128xf32>
    %25 = arith.addf %22, %24 : vector<16x128xf32>
    %cst_17 = arith.constant 0.000000e+00 : f32
    %26 = vector.broadcast %cst_17 : f32 to vector<16x128xf32>
    %27 = arith.maximumf %25, %26 : vector<16x128xf32>
    %28 = arith.truncf %27 : vector<16x128xf32> to vector<16x128xbf16>
    %cst_18 = arith.constant dense<0.000000e+00> : vector<16x128xf32>
    %29 = tpu.matmul %0, %28, %cst_18 {dimension_numbers = #tpu.dot_dimension_numbers<[1], [0], [0], [1], [0, 0, 1, 1], [], []>} : vector<16x16xbf16>, vector<16x128xbf16>, vector<16x128xf32> -> vector<16x128xf32>
    %30 = vector.broadcast %1 : vector<16x1xf32> to vector<16x128xf32>
    %31 = arith.mulf %29, %30 : vector<16x128xf32>
    %32 = arith.truncf %31 : vector<16x128xf32> to vector<16x128xbf16>
    %33 = tpu.concatenate %32, %28 in 1 : vector<16x128xbf16>, vector<16x128xbf16> -> vector<16x256xbf16>
    %c0_19 = arith.constant 0 : index
    %c0_20 = arith.constant 0 : index
    %34 = vector.load %arg7[%c0_19, %c0_20] : memref<256x128xbf16, #tpu.memory_space<vmem>>, vector<256x128xbf16>
    %cst_21 = arith.constant dense<0.000000e+00> : vector<16x128xf32>
    %35 = tpu.matmul %33, %34, %cst_21 {dimension_numbers = #tpu.dot_dimension_numbers<[1], [0], [0], [1], [0, 0, 1, 1], [], []>} : vector<16x256xbf16>, vector<256x128xbf16>, vector<16x128xf32> -> vector<16x128xf32>
    %c0_22 = arith.constant 0 : index
    %c0_23 = arith.constant 0 : index
    %36 = vector.load %arg8[%c0_22, %c0_23] : memref<1x128xf32, #tpu.memory_space<vmem>>, vector<1x128xf32>
    %37 = vector.broadcast %36 : vector<1x128xf32> to vector<16x128xf32>
    %38 = arith.addf %35, %37 : vector<16x128xf32>
    %c0_24 = arith.constant 0 : index
    %c0_25 = arith.constant 0 : index
    %39 = vector.load %arg9[%c0_24, %c0_25] : memref<16x128xf32, #tpu.memory_space<vmem>>, vector<16x128xf32>
    tpu.vector_store %arg9[%c0_24, %c0_25], %38 {strides = array<i32>} : memref<16x128xf32, #tpu.memory_space<vmem>>, vector<16x128xf32>,
    return
  }
}

</mosaic_0001>

<bundles_post_ra>
// kernel: tpu_custom_call.1
= control target key start
LH: loop header
LB: loop body
LE: loop exit
PB: predicated region body
PF: predicated region fallthrough
CT: control target
= control target key end

     0   :  { %14 = vsyncpa [#allocation3], 0  ;;  %s1267_s0 = inlined_call_operand.vmem [shape: bf16[16,16], index: 0, kind: input, shape index: {}]   ;;  %s1268_s1 = inlined_call_operand.vmem [shape: f32[16,1], index: 1, kind: input, shape index: {}]   ;;  %s1269_s2 = inlined_call_operand.vmem [shape: bf16[16,128], index: 2, kind: input, shape index: {}]   ;;  %s1270_s3 = inlined_call_operand.hbm [shape: bf16[256,128], index: 3, kind: input, shape index: {}]   ;;  %s1271_s4 = inlined_call_operand.vmem [shape: f32[1,128], index: 4, kind: input, shape index: {}]   ;;  %s1272_s5 = inlined_call_operand.hbm [shape: bf16[256,128], index: 5, kind: input, shape index: {}]   ;;  %s1273_s6 = inlined_call_operand.vmem [shape: f32[1,128], index: 6, kind: input, shape index: {}]   ;;  %s1274_s7 = inlined_call_operand.hbm [shape: bf16[256,128], index: 7, kind: input, shape index: {}]   ;;  %s1275_s8 = inlined_call_operand.vmem [shape: f32[1,128], index: 8, kind: input, shape index: {}]   ;;  %s1276_s9 = inlined_call_operand.hbm [shape: f32[16,128], index: 9, kind: output, shape index: {}]  }
   0x1   :  { %15 = vsyncpa [#allocation6], 0 }
   0x2   :  { %16 = vsyncpa [#allocation4], 0  ;;  %s1094_s30 = smov [#allocation5]   ;;  %s1095_s11 = smov [#allocation2]  }
   0x3   :  { %s42_s10 = sshll.u32 %s1094_s30, 4  ;;  %s28_s12 = sshll.u32 %s1095_s11, 4  ;;  %s43_s10 = int_to_ptr.vmem [resolvable:$true] %s42_s10  ;;  %s1155_s12 = int_to_ptr.vmem [resolvable:$true] %s28_s12 }
   0x4   :  { %s1000_s15 = scalar_lea.hbm %s1272_s5, 2048 }
   0x5   :  { %p1001_p0 = scmp.ne.s32.totalorder %s1272_s5, %s1000_s15  ;;  %p1004_p1 = scmp.lt.u32.totalorder %s1000_s15, %s1272_s5 }
   0x7   :  { %p1006_p2 = pnand %p1004_p1, %p1001_p0 }
   0x9   :  { %1009 = shalt.err (!%p1006_p2)
}
   0xa   :  { %s1010_s20 = scalar_lea.vmem %s43_s10, 2048  ;;  %p1015_p4 = scmp.lt.s32.totalorder %s43_s10, %s43_s10 }
   0xb   :  { %p1011_p3 = scmp.ne.s32.totalorder %s43_s10, %s1010_s20  ;;  %p1016_p5 = scmp.lt.s32.totalorder %s1010_s20, %s1010_s20 }
   0xd   :  { %p1017_p6 = por %p1016_p5, %p1015_p4 }
   0xf   :  { %p1018_p7 = pnand %p1017_p6, %p1011_p3 }
  0x11   :  { %1021 = shalt.err (!%p1018_p7)
}
  0x12   :  { %s1096_s21 = smov 64   ;;  %s1097_s22 = smov 4  }
  0x13   :  { %48 = dma.hbm_to_vmem [thread:$0]  %s1272_s5, 2048, %s43_s10, [#allocation6], %s1096_s21, %s1096_s21, %s1097_s22  }
  0x14   :  { %s1022_s27 = scalar_lea.hbm %s1270_s3, 2048 }
  0x15   :  { %p1023_p8 = scmp.ne.s32.totalorder %s1270_s3, %s1022_s27  ;;  %p1026_p9 = scmp.lt.u32.totalorder %s1022_s27, %s1270_s3 }
  0x17   :  { %p1028_p10 = pnand %p1026_p9, %p1023_p8 }
  0x19   :  { %1031 = shalt.err (!%p1028_p10)
}
  0x1a   :  { %s1032_s13 = scalar_lea.vmem %s1155_s12, 2048  ;;  %p1037_p12 = scmp.lt.s32.totalorder %s1155_s12, %s1155_s12 }
  0x1b   :  { %p1033_p11 = scmp.ne.s32.totalorder %s1155_s12, %s1032_s13  ;;  %p1038_p13 = scmp.lt.s32.totalorder %s1032_s13, %s1032_s13 }
  0x1d   :  { %p1039_p0 = por %p1038_p13, %p1037_p12 }
  0x1f   :  { %p1040_p1 = pnand %p1039_p0, %p1033_p11 }
  0x21   :  { %1043 = shalt.err (!%p1040_p1)
}
  0x22   :  { %34 = dma.hbm_to_vmem [thread:$0]  %s1270_s3, 2048, %s1155_s12, [#allocation3], %s1096_s21, %s1096_s21, %s1097_s22  }
  0x23   :  { %s1098_s14 = smov [#allocation7]   ;;  %s1044_s18 = scalar_lea.hbm %s1274_s7, 2048 }
  0x24   :  { %s56_s15 = sshll.u32 %s1098_s14, 4  ;;  %p1045_p2 = scmp.ne.s32.totalorder %s1274_s7, %s1044_s18  ;;  %s57_s15 = int_to_ptr.vmem [resolvable:$true] %s56_s15 }
  0x25   :  { %p1048_p3 = scmp.lt.u32.totalorder %s1044_s18, %s1274_s7 }
  0x27   :  { %p1050_p4 = pnand %p1048_p3, %p1045_p2 }
  0x29   :  { %1053 = shalt.err (!%p1050_p4)
}
  0x2a   :  { %s1054_s25 = scalar_lea.vmem %s57_s15, 2048  ;;  %p1059_p6 = scmp.lt.s32.totalorder %s57_s15, %s57_s15 }
  0x2b   :  { %p1055_p5 = scmp.ne.s32.totalorder %s57_s15, %s1054_s25  ;;  %p1060_p7 = scmp.lt.s32.totalorder %s1054_s25, %s1054_s25 }
  0x2d   :  { %p1061_p8 = por %p1060_p7, %p1059_p6 }
  0x2f   :  { %p1062_p9 = pnand %p1061_p8, %p1055_p5 }
  0x31   :  { %1065 = shalt.err (!%p1062_p9)
}
  0x32   :  { %62 = dma.hbm_to_vmem [thread:$0]  %s1274_s7, 2048, %s57_s15, [#allocation6], %s1096_s21, %s1096_s21, %s1097_s22  }
  0x33   :  { %1088 = dma.done.wait [#allocation3], 2048  }
  0x34   :  { %1089 = vsyncadd [#allocation3], 4294965248 }
  0x35   :  { %1090 = dma.done.wait [#allocation6], 4096  }
  0x36   :  { %1091 = vsyncadd [#allocation6], 4294963200  ;;  %v1099_v0 = vmov 0.0   ;;  %vm1100_vm0 = vmmov 0   ;;  %v1101_v1 = vmov 0   ;;  %v950_v2 = vld [vmem:[%s1269_s2] sm:$0xff]  }
  0x37   :  { %920 = vmatprep.subr.bf16.mxu0 %v1099_v0  ;;  %922 = vmatprep.mubr.msk.bf16.mxu0 %vm1100_vm0, %v1099_v0  ;;  %v1216_v3 = vld [vmem:[%s1267_s0] sm:$0xff]   ;;  %vm92_vm1 = vcmask 130048   ;;  %v78_v5 = vld [vmem:[%s1268_s1 + $0x8] sm:$0xff]  ;;  %v956_v10 = vld [vmem:[#allocation2 + $0x50] sm:$0xff]   ;;  %s1102_s13 = smov [#allocation8]  }
  0x38   :  { %949 = vset.pattern.permute.xlu0 %v1101_v1  ;;  %921 = vmatpush3.bf16.msra.mxu0 %v950_v2  ;;  %v77_v4 = vld [vmem:[%s1268_s1] sm:$0xff]  ;;  %v954_v8 = vld [vmem:[#allocation2 + $0x48] sm:$0xff]   ;;  %v957_v11 = vld [vmem:[#allocation2 + $0x10] sm:$0xff]   ;;  %s779_s5 = sshll.u32 %s1102_s13, 4  ;;  %s780_s5 = int_to_ptr.vmem [resolvable:$true] %s779_s5 }
  0x39   :  { %317 = vmatprep.mubr.bf16.mxu1 %v950_v2  ;;  %139 = vperm.xlu0 %949, %v77_v4   ;;  %v952_v6 = vld [vmem:[#allocation2 + $0x40] sm:$0xff]   ;;  %v955_v9 = vld [vmem:[#allocation2 + $0x8] sm:$0xff]   ;;  %v958_v12 = vld [vmem:[#allocation2 + $0x58] sm:$0xff]   ;;  %s1066_s10 = scalar_lea.vmem %s780_s5, 256  ;;  %p1071_p11 = scmp.lt.s32.totalorder %s780_s5, %s780_s5 }
  0x3a   :  { %926 = vmatprep.subr.bf16.mxu0 %v1099_v0  ;;  %v953_v7 = vld [vmem:[#allocation2] sm:$0xff]   ;;  %850 = vmatprep.subr.bf16.mxu1 %v952_v6  ;;  %v959_v13 = vld [vmem:[#allocation2 + $0x18] sm:$0xff]   ;;  %v962_v16 = vld [vmem:[#allocation2 + $0x68] sm:$0xff]   ;;  %p1067_p10 = scmp.ne.s32.totalorder %s780_s5, %s1066_s10  ;;  %p1072_p12 = scmp.lt.s32.totalorder %s1066_s10, %s1066_s10 }
  0x3b   :  { %923 = vmatmul.mubr.msk.bf16.vlgmr.msra.gmra.mrb[0].mxu0 %vm92_vm1, %v1216_v3  ;;  %851 = vmatpush3.bf16.msra.mxu1 %v953_v7  ;;  %v960_v14 = vld [vmem:[#allocation2 + $0x60] sm:$0xff]   ;;  %v963_v17 = vld [vmem:[#allocation2 + $0x28] sm:$0xff]   ;;  %v964_v18 = vld [vmem:[#allocation2 + $0x70] sm:$0xff]  }
  0x3c   :  { %928 = vmatprep.mubr.msk.bf16.mxu0 %vm1100_vm0, %v1099_v0  ;;  %852 = vmatprep.subr.bf16.mxu1 %v954_v8  ;;  %v961_v15 = vld [vmem:[#allocation2 + $0x20] sm:$0xff]   ;;  %v965_v19 = vld [vmem:[#allocation2 + $0x30] sm:$0xff]   ;;  %v966_v20 = vld [vmem:[#allocation2 + $0x78] sm:$0xff]   ;;  %p1073_p13 = por %p1072_p12, %p1071_p11 }
  0x3d   :  { %144 = vperm.xlu0 %949, %v78_v5   ;;  %v967_v21 = vld [vmem:[#allocation2 + $0x38] sm:$0xff]   ;;  %v795_v32 = vld [vmem:[%s1271_s4] ss:$0 sm:$0xff]  ;;  %v970_v45 = vld [vmem:[#allocation5 + $0x48] sm:$0xff]  }
  0x3e   :  { %v968_v42 = vld [vmem:[#allocation5 + $0x40] sm:$0xff]   ;;  %v971_v46 = vld [vmem:[#allocation5 + $0x8] sm:$0xff]   ;;  %v972_v47 = vld [vmem:[#allocation5 + $0x50] sm:$0xff]   ;;  %p1074_p0 = pnand %p1073_p13, %p1067_p10 }
  0x3f   :  { %853 = vmatpush3.bf16.msra.mxu1 %v955_v9  ;;  %v969_v44 = vld [vmem:[#allocation5] sm:$0xff]   ;;  %v973_v48 = vld [vmem:[#allocation5 + $0x10] sm:$0xff]   ;;  %v974_v49 = vld [vmem:[#allocation5 + $0x58] sm:$0xff]  }
  0x40   :  { %854 = vmatprep.subr.bf16.mxu1 %v956_v10  ;;  %v975_v50 = vld [vmem:[#allocation5 + $0x18] sm:$0xff]   ;;  %v976_v51 = vld [vmem:[#allocation5 + $0x60] sm:$0xff]   ;;  %v978_v53 = vld [vmem:[#allocation5 + $0x68] sm:$0xff]  }
  0x41   :  { %v977_v52 = vld [vmem:[#allocation5 + $0x20] sm:$0xff]   ;;  %v979_v54 = vld [vmem:[#allocation5 + $0x28] sm:$0xff]   ;;  %v980_v55 = vld [vmem:[#allocation5 + $0x70] sm:$0xff]  }
  0x42   :  { %v981_v56 = vld [vmem:[#allocation5 + $0x30] sm:$0xff]   ;;  %v982_v57 = vld [vmem:[#allocation5 + $0x78] sm:$0xff]   ;;  %v984_v4 = vld [vmem:[#allocation7 + $0x40] sm:$0xff]  }
  0x43   :  { %855 = vmatpush3.bf16.msra.mxu1 %v957_v11  ;;  %v983_v58 = vld [vmem:[#allocation5 + $0x38] sm:$0xff]   ;;  %v985_v5 = vld [vmem:[#allocation7] sm:$0xff]   ;;  %v986_v6 = vld [vmem:[#allocation7 + $0x48] sm:$0xff]  }
  0x44   :  { %856 = vmatprep.subr.bf16.mxu1 %v958_v12  ;;  %v987_v7 = vld [vmem:[#allocation7 + $0x8] sm:$0xff]   ;;  %v988_v8 = vld [vmem:[#allocation7 + $0x50] sm:$0xff]   ;;  %v990_v10 = vld [vmem:[#allocation7 + $0x58] sm:$0xff]  }
  0x45   :  { %v989_v9 = vld [vmem:[#allocation7 + $0x10] sm:$0xff]   ;;  %v991_v11 = vld [vmem:[#allocation7 + $0x18] sm:$0xff]   ;;  %v992_v12 = vld [vmem:[#allocation7 + $0x60] sm:$0xff]  }
  0x47   :  { %857 = vmatpush3.bf16.msra.mxu1 %v959_v13  ;;  %v993_v13 = vld [vmem:[#allocation7 + $0x20] sm:$0xff]  }
  0x48   :  { %858 = vmatprep.subr.bf16.mxu1 %v960_v14  ;;  %v995_v14 = vld [vmem:[#allocation7 + $0x28] sm:$0xff]  }
  0x4b   :  { %859 = vmatpush3.bf16.msra.mxu1 %v961_v15  ;;  %v996_v15 = vld [vmem:[#allocation7 + $0x70] sm:$0xff]  }
  0x4c   :  { %860 = vmatprep.subr.bf16.mxu1 %v962_v16 }
  0x4f   :  { %861 = vmatpush3.bf16.msra.mxu1 %v963_v17  ;;  %v813_v17 = vld [vmem:[%s1273_s6] ss:$0 sm:$0xff] }
  0x50   :  { %862 = vmatprep.subr.bf16.mxu1 %v964_v18 }
  0x53   :  { %863 = vmatpush3.bf16.msra.mxu1 %v965_v19 }
  0x54   :  { %864 = vmatprep.subr.bf16.mxu1 %v966_v20 }
  0x57   :  { %865 = vmatpush3.bf16.msra.mxu1 %v967_v21 }
  0x58   :  { %898 = vmatprep.subr.bf16.mxu1 %v984_v4 }
  0xb8   :  { %v1229_v22 = vpop.permute.xlu0 %139 }
  0xbc   :  { %v1231_v25 = vpop.permute.xlu0 %144 }
 0x10e   :  { %v130_v23 = vpop.f32.mrb[0].mxu0 }
 0x10f   :  { %v924_v24 = vpop.f32.mrb[1].mxu0  ;;  %v147_v27 = vmul.f32 %v1229_v22, %v130_v23 }
 0x110   :  { %v133_v26 = vpop.f32.mrb[2].mxu0 }
 0x111   :  { %v148_v28 = vmul.f32 %v1231_v25, %v133_v26  ;;  %v925_v29 = vpop.f32.mrb[3].mxu0 }
 0x113   :  { %v149_v30 = vpack.c.bf16 %v148_v28, %v147_v27 }
 0x115   :  { %318 = vmatmul.mubr.bf16.vlgmr.msra.gmra.mrb[0].mxu1 %v149_v30  ;;  %v997_v30 = vld [vmem:[#allocation7 + $0x30] sm:$0xff]  }
 0x116   :  { %899 = vmatpush3.bf16.msra.mxu1 %v985_v5 }
 0x117   :  { %900 = vmatprep.subr.bf16.mxu1 %v986_v6 }
 0x11a   :  { %901 = vmatpush3.bf16.msra.mxu1 %v987_v7 }
 0x11b   :  { %902 = vmatprep.subr.bf16.mxu1 %v988_v8 }
 0x11e   :  { %903 = vmatpush3.bf16.msra.mxu1 %v989_v9 }
 0x11f   :  { %904 = vmatprep.subr.bf16.mxu1 %v990_v10 }
 0x122   :  { %905 = vmatpush3.bf16.msra.mxu1 %v991_v11 }
 0x123   :  { %906 = vmatprep.subr.bf16.mxu1 %v992_v12 }
 0x126   :  { %907 = vmatpush3.bf16.msra.mxu1 %v993_v13 }
 0x1e8   :  { %v866_v31 = vpop.f32.mrb[0].mxu1 }
 0x1e9   :  { %v867_v33 = vpop.f32.mrb[1].mxu1 }
 0x1ea   :  { %v868_v34 = vadd.f32 %v867_v33, %v866_v31  ;;  %v869_v35 = vpop.f32.mrb[2].mxu1  ;;  %v998_v31 = vld [vmem:[#allocation7 + $0x78] sm:$0xff]  }
 0x1eb   :  { %v870_v36 = vpop.f32.mrb[3].mxu1 }
 0x1ec   :  { %v320_v37 = vadd.f32 %v868_v34, %v795_v32  ;;  %v871_v38 = vadd.f32 %v870_v36, %v869_v35 }
 0x1ee   :  { %v323_v39 = vadd.f32 %v871_v38, %v795_v32  ;;  %v326_v40 = vmax.f32 %v320_v37, 0.0  ;;  %v999_v32 = vld [vmem:[#allocation7 + $0x38] sm:$0xff]  }
 0x1f0   :  { %v327_v41 = vmax.f32 %v323_v39, 0.0 }
 0x1f2   :  { %v328_v43 = vpack.c.bf16 %v327_v41, %v326_v40 }
 0x1f4   :  { %927 = vmatpush3.bf16.msra.mxu0 %v328_v43 }
 0x1f5   :  { %874 = vmatprep.subr.bf16.mxu0 %v968_v42 }
 0x1f7   :  { %929 = vmatmul.mubr.msk.bf16.vlgmr.msra.gmra.mrb[4].mxu0 %vm92_vm1, %v1216_v3 }
 0x1f8   :  { %540 = vmatprep.mubr.bf16.mxu0 %v328_v43  ;;  %875 = vmatpush3.bf16.msra.mxu0 %v969_v44 }
 0x1f9   :  { %876 = vmatprep.subr.bf16.mxu0 %v970_v45 }
 0x1fc   :  { %877 = vmatpush3.bf16.msra.mxu0 %v971_v46 }
 0x1fd   :  { %878 = vmatprep.subr.bf16.mxu0 %v972_v47 }
 0x200   :  { %879 = vmatpush3.bf16.msra.mxu0 %v973_v48 }
 0x201   :  { %880 = vmatprep.subr.bf16.mxu0 %v974_v49 }
 0x204   :  { %881 = vmatpush3.bf16.msra.mxu0 %v975_v50 }
 0x205   :  { %882 = vmatprep.subr.bf16.mxu0 %v976_v51 }
 0x208   :  { %883 = vmatpush3.bf16.msra.mxu0 %v977_v52 }
 0x209   :  { %884 = vmatprep.subr.bf16.mxu0 %v978_v53 }
 0x20c   :  { %885 = vmatpush3.bf16.msra.mxu0 %v979_v54 }
 0x20d   :  { %886 = vmatprep.subr.bf16.mxu0 %v980_v55 }
 0x210   :  { %887 = vmatpush3.bf16.msra.mxu0 %v981_v56 }
 0x211   :  { %888 = vmatprep.subr.bf16.mxu0 %v982_v57 }
 0x214   :  { %889 = vmatpush3.bf16.msra.mxu0 %v983_v58 }
 0x215   :  { %932 = vmatprep.subr.bf16.mxu0 %v1099_v0 }
 0x2ca   :  { %v363_v59 = vpop.f32.mrb[4].mxu0 }
 0x2cb   :  { %v930_v60 = vpop.f32.mrb[5].mxu0  ;;  %v370_v62 = vmul.f32 %v363_v59, %v1229_v22 }
 0x2cc   :  { %v366_v61 = vpop.f32.mrb[6].mxu0 }
 0x2cd   :  { %v371_v63 = vmul.f32 %v366_v61, %v1231_v25  ;;  %v931_v1 = vpop.f32.mrb[7].mxu0 }
 0x2cf   :  { %v372_v2 = vpack.c.bf16 %v371_v63, %v370_v62 }
 0x2d1   :  { %541 = vmatmul.mubr.bf16.vlgmr.msra.gmra.mrb[8].mxu0 %v372_v2 }
 0x2d2   :  { %934 = vmatprep.mubr.msk.bf16.mxu0 %vm1100_vm0, %v1099_v0  ;;  %v994_v0 = vld [vmem:[#allocation7 + $0x68] sm:$0xff]  }
 0x2d3   :  { %908 = vmatprep.subr.bf16.mxu1 %v994_v0 }
 0x2d4   :  { %909 = vmatpush3.bf16.msra.mxu1 %v995_v14 }
 0x2d5   :  { %910 = vmatprep.subr.bf16.mxu1 %v996_v15 }
 0x2d8   :  { %911 = vmatpush3.bf16.msra.mxu1 %v997_v30 }
 0x2d9   :  { %912 = vmatprep.subr.bf16.mxu1 %v998_v31 }
 0x2dc   :  { %913 = vmatpush3.bf16.msra.mxu1 %v999_v32 }
 0x3a4   :  { %v890_v16 = vpop.f32.mrb[8].mxu0 }
 0x3a5   :  { %v891_v18 = vpop.f32.mrb[9].mxu0 }
 0x3a6   :  { %v892_v19 = vadd.f32 %v891_v18, %v890_v16  ;;  %v893_v20 = vpop.f32.mrb[10].mxu0 }
 0x3a7   :  { %v894_v21 = vpop.f32.mrb[11].mxu0 }
 0x3a8   :  { %v543_v23 = vadd.f32 %v892_v19, %v813_v17  ;;  %v895_v24 = vadd.f32 %v894_v21, %v893_v20 }
 0x3aa   :  { %v546_v26 = vadd.f32 %v895_v24, %v813_v17  ;;  %v549_v27 = vmax.f32 %v543_v23, 0.0 }
 0x3ac   :  { %v550_v28 = vmax.f32 %v546_v26, 0.0 }
 0x3ae   :  { %v551_v29 = vpack.c.bf16 %v550_v28, %v549_v27 }
 0x3b0   :  { %933 = vmatpush3.bf16.msra.mxu0 %v551_v29  ;;  %763 = vmatprep.mubr.bf16.mxu1 %v551_v29 }
 0x3b3   :  { %935 = vmatmul.mubr.msk.bf16.vlgmr.msra.gmra.mrb[12].mxu0 %vm92_vm1, %v1216_v3  ;;  %v831_v3 = vld [vmem:[%s1275_s8] ss:$0 sm:$0xff] }
 0x486   :  { %v586_v33 = vpop.f32.mrb[12].mxu0 }
 0x487   :  { %v936_v34 = vpop.f32.mrb[13].mxu0  ;;  %v593_v36 = vmul.f32 %v586_v33, %v1229_v22 }
 0x488   :  { %v589_v35 = vpop.f32.mrb[14].mxu0 }
 0x489   :  { %v594_v37 = vmul.f32 %v589_v35, %v1231_v25  ;;  %v937_v38 = vpop.f32.mrb[15].mxu0 }
 0x48b   :  { %v595_v39 = vpack.c.bf16 %v594_v37, %v593_v36 }
 0x48d   :  { %764 = vmatmul.mubr.bf16.vlgmr.msra.gmra.mrb[4].mxu1 %v595_v39 }
 0x560   :  { %v914_v40 = vpop.f32.mrb[4].mxu1 }
 0x561   :  { %v915_v41 = vpop.f32.mrb[5].mxu1 }
 0x562   :  { %v916_v42 = vadd.f32 %v915_v41, %v914_v40  ;;  %v917_v43 = vpop.f32.mrb[6].mxu1 }
 0x563   :  { %v918_v44 = vpop.f32.mrb[7].mxu1 }
 0x564   :  { %v766_v45 = vadd.f32 %v916_v42, %v831_v3  ;;  %v919_v46 = vadd.f32 %v918_v44, %v917_v43 }
 0x566   :  { %772 = vst [vmem:[#allocation8] sm:$0xff] %v766_v45  ;;  %v769_v22 = vadd.f32 %v919_v46, %v831_v3 }
 0x568   :  { %773 = vst [vmem:[#allocation8 + $0x8] sm:$0xff] %v769_v22 }
 0x569   :  { %1077 = shalt.err (!%p1074_p0)
}
 0x56a   :  { %s1078_s15 = scalar_lea.hbm %s1276_s9, 256 }
 0x56b   :  { %p1079_p1 = scmp.ne.s32.totalorder %s1276_s9, %s1078_s15  ;;  %p1082_p2 = scmp.lt.u32.totalorder %s1078_s15, %s1276_s9 }
 0x56d   :  { %p1084_p3 = pnand %p1082_p2, %p1079_p1 }
 0x56f   :  { %1087 = shalt.err (!%p1084_p3)
}
 0x570   :  { %s1103_s20 = smov 128   ;;  %s1104_s23 = smov 8  }
 0x571   :  { %785 = dma.vmem_to_hbm [thread:$0]  %s780_s5, 256, %s1276_s9, [#allocation4], %s1103_s20, %s1103_s20, %s1104_s23  }
 0x572   :  { %1092 = dma.done.wait [#allocation4], 256  }
 0x573   :  { %1093 = vsyncadd [#allocation4], 4294967040 }
 0x574   :  { %789 = vsyncpa [#allocation3], 1 }
 0x575   :  { %790 = vsyncpa [#allocation6], 1 }
 0x576   :  { %791 = vsyncpa [#allocation4], 1 }

</bundles_post_ra>
